<compile_context>
chip_gen: v7x
topology: tpu7x:2x2x1
jax: 0.10.0
libtpu: 0.0.40
codegen_flags: <defaults>
</compile_context>

<pallas_src>
import functools
import math

import jax
import jax.numpy as jnp
from jax.experimental import pallas as pl
from jax.experimental.pallas import tpu as pltpu

# Module hyper-parameters (from the PyTorch source).
FEATURE_SIZE = 2
HIDDEN_SIZE = 10
NUM_LAYERS = 1
SEQ_LENGTH = 5
TARGET_SIZE = 1
FC1_OUT = 30

IN_FLAT = SEQ_LENGTH * FEATURE_SIZE      # 10
H2 = 2 * HIDDEN_SIZE                     # 20
RNN_FLAT = SEQ_LENGTH * H2               # 100


def _rnn_mlp_kernel(x_ref, win_ref, bin_ref, whh_ref, w1_ref, b1_ref,
                    w2_ref, b2_ref, out_ref):
    """One batch tile; batch lives on the lane axis.

    Shapes (all float32):
      x    : (S*F, T)        inputs, flattened time-major per sample, batch on lanes
      win  : (S*2H, S*F)     fused block-diagonal input projection (both dirs, all t)
      bin  : (S*2H, 1)       b_ih + b_hh per row block
      whh  : (2H, 2H)        blockdiag(W_hh_fwd, W_hh_bwd)
      w1   : (30, S*2H)      fc1 weight, columns rearranged for the fused loop
      b1   : (30, 1)
      w2   : (1, 30), b2 : (1, 1)
      out  : (1, T)          lane-dense output
    """
    xT = x_ref[...]                                    # (S*F, T)
    T = xT.shape[1]

    # One MXU pass projects every timestep for both directions; biases folded in.
    xproj = (jnp.dot(win_ref[...], xT, preferred_element_type=jnp.float32)
             + bin_ref[...])                           # (S*2H, T)

    whh = whh_ref[...]                                 # (2H, 2H)
    w1 = w1_ref[...]                                   # (30, S*2H)

    h = jnp.zeros((H2, T), dtype=jnp.float32)          # [h_fwd ; h_bwd]
    y1 = jnp.broadcast_to(b1_ref[...], (FC1_OUT, T))   # fc1 bias, hoisted broadcast

    # Fused fwd+bwd recurrence: step i carries [h_fwd(t=i) ; h_bwd(t=S-1-i)].
    # xproj row-block i and w1 column-block i are pre-arranged to match.
    for i in range(SEQ_LENGTH):
        xp = xproj[i * H2:(i + 1) * H2, :]             # (2H, T)
        h = jnp.tanh(xp + jnp.dot(whh, h, preferred_element_type=jnp.float32))
        y1 = y1 + jnp.dot(w1[:, i * H2:(i + 1) * H2], h,
                          preferred_element_type=jnp.float32)

    # Dropout is identity at inference time.
    y1 = jnp.maximum(y1, 0.0)                          # ReLU
    out_ref[...] = (jnp.dot(w2_ref[...], y1, preferred_element_type=jnp.float32)
                    + b2_ref[...])                     # (1, T) lane-dense store


@functools.partial(jax.jit, static_argnames=("batch_tile",))
def model_forward(x, params, batch_tile=512):
    """x: (B, S, F) float32 -> (B,) float32 (matches torch.flatten output)."""
    B = x.shape[0]
    # Batch-on-lanes: (B, S, F) -> (S*F, B); row index = t*F + f (row-major).
    xT = x.reshape(B, IN_FLAT).T.astype(jnp.float32)

    if B <= batch_tile:
        tile = B                     # single full-array block (always legal)
        Bp = B
    else:
        assert batch_tile % 128 == 0, "batch_tile must be a multiple of 128"
        tile = batch_tile
        Bp = -(-B // tile) * tile
        xT = jnp.pad(xT, ((0, 0), (0, Bp - B)))

    grid = (Bp // tile,)

    weight_keys = ("w_in", "b_in", "w_hh", "w1", "b1", "w2", "b2")
    w_specs = [pl.BlockSpec(params[k].shape, lambda i: (0, 0))
               for k in weight_keys]

    out = pl.pallas_call(
        _rnn_mlp_kernel,
        out_shape=jax.ShapeDtypeStruct((1, Bp), jnp.float32),
        grid=grid,
        in_specs=[pl.BlockSpec((IN_FLAT, tile), lambda i: (0, i))] + w_specs,
        out_specs=pl.BlockSpec((1, tile), lambda i: (0, i)),
        compiler_params=pltpu.CompilerParams(
            dimension_semantics=("parallel",)),
    )(xT, *(params[k] for k in weight_keys))

    return out[0, :B]


def init_raw_params(key):
    """Deterministic synthetic parameters with the nn.Module's native shapes."""
    ks = jax.random.split(key, 12)
    s = 1.0 / math.sqrt(HIDDEN_SIZE)

    def u(k, shape, scale):
        return jax.random.uniform(k, shape, jnp.float32, -scale, scale)

    raw = dict(
        wih_f=u(ks[0], (HIDDEN_SIZE, FEATURE_SIZE), s),   # weight_ih_l0
        whh_f=u(ks[1], (HIDDEN_SIZE, HIDDEN_SIZE), s),    # weight_hh_l0
        bih_f=u(ks[2], (HIDDEN_SIZE,), s),
        bhh_f=u(ks[3], (HIDDEN_SIZE,), s),
        wih_b=u(ks[4], (HIDDEN_SIZE, FEATURE_SIZE), s),   # *_l0_reverse
        whh_b=u(ks[5], (HIDDEN_SIZE, HIDDEN_SIZE), s),
        bih_b=u(ks[6], (HIDDEN_SIZE,), s),
        bhh_b=u(ks[7], (HIDDEN_SIZE,), s),
    )
    s1 = 1.0 / math.sqrt(RNN_FLAT)
    raw["w1"] = u(ks[8], (FC1_OUT, RNN_FLAT), s1)
    raw["b1"] = u(ks[9], (FC1_OUT,), s1)
    s2 = 1.0 / math.sqrt(FC1_OUT)
    raw["w2"] = u(ks[10], (TARGET_SIZE, FC1_OUT), s2)
    raw["b2"] = u(ks[11], (TARGET_SIZE,), s2)
    return raw


def prepare_params(raw):
    """Algebraic pre-fusion of the PyTorch weights into the kernel layout."""
    w_in = jnp.zeros((RNN_FLAT, IN_FLAT), jnp.float32)
    b_in = jnp.zeros((RNN_FLAT, 1), jnp.float32)
    w1_re = jnp.zeros((FC1_OUT, RNN_FLAT), jnp.float32)
    bf = (raw["bih_f"] + raw["bhh_f"]).reshape(HIDDEN_SIZE, 1)
    bb = (raw["bih_b"] + raw["bhh_b"]).reshape(HIDDEN_SIZE, 1)

    for i in range(SEQ_LENGTH):
        j = SEQ_LENGTH - 1 - i
        # Fused step i: forward direction at time t=i ...
        w_in = w_in.at[i * H2:i * H2 + HIDDEN_SIZE,
                       i * FEATURE_SIZE:(i + 1) * FEATURE_SIZE].set(raw["wih_f"])
        # ... backward direction at time t=S-1-i.
        w_in = w_in.at[i * H2 + HIDDEN_SIZE:(i + 1) * H2,
                       j * FEATURE_SIZE:(j + 1) * FEATURE_SIZE].set(raw["wih_b"])
        b_in = b_in.at[i * H2:i * H2 + HIDDEN_SIZE, :].set(bf)
        b_in = b_in.at[i * H2 + HIDDEN_SIZE:(i + 1) * H2, :].set(bb)
        # fc1 columns rearranged to match [fwd_i | bwd_{S-1-i}] of the fused step.
        w1_re = w1_re.at[:, i * H2:i * H2 + HIDDEN_SIZE].set(
            raw["w1"][:, i * H2:i * H2 + HIDDEN_SIZE])
        w1_re = w1_re.at[:, i * H2 + HIDDEN_SIZE:(i + 1) * H2].set(
            raw["w1"][:, j * H2 + HIDDEN_SIZE:(j + 1) * H2])

    w_hh = jnp.zeros((H2, H2), jnp.float32)
    w_hh = w_hh.at[:HIDDEN_SIZE, :HIDDEN_SIZE].set(raw["whh_f"])
    w_hh = w_hh.at[HIDDEN_SIZE:, HIDDEN_SIZE:].set(raw["whh_b"])

    return dict(
        w_in=w_in, b_in=b_in, w_hh=w_hh,
        w1=w1_re, b1=raw["b1"].reshape(FC1_OUT, 1),
        w2=raw["w2"], b2=raw["b2"].reshape(TARGET_SIZE, 1),
    )


def reference_forward(x, raw):
    """Pure-JAX reference of the PyTorch forward (dropout = identity)."""
    B, S, _ = x.shape
    h = jnp.zeros((B, HIDDEN_SIZE), jnp.float32)
    hf = []
    for t in range(S):
        h = jnp.tanh(x[:, t, :] @ raw["wih_f"].T + h @ raw["whh_f"].T
                     + raw["bih_f"] + raw["bhh_f"])
        hf.append(h)
    h = jnp.zeros((B, HIDDEN_SIZE), jnp.float32)
    hb = [None] * S
    for t in range(S - 1, -1, -1):
        h = jnp.tanh(x[:, t, :] @ raw["wih_b"].T + h @ raw["whh_b"].T
                     + raw["bih_b"] + raw["bhh_b"])
        hb[t] = h
    flat = jnp.concatenate(
        [jnp.concatenate([hf[t], hb[t]], axis=-1) for t in range(S)], axis=-1)
    y = jnp.maximum(flat @ raw["w1"].T + raw["b1"], 0.0)
    y = y @ raw["w2"].T + raw["b2"]
    return y.reshape(-1)


if __name__ == "__main__":
    key = jax.random.PRNGKey(0)
    k_x, k_p, k_x2 = jax.random.split(key, 3)

    raw = init_raw_params(k_p)
    params = prepare_params(raw)

    # Small shape consistent with the module spec.
    batch = 2
    x = jax.random.normal(k_x, (batch, SEQ_LENGTH, FEATURE_SIZE), jnp.float32)
    out = jax.block_until_ready(model_forward(x, params))
    ref = reference_forward(x, raw)
    assert out.shape == (batch,), out.shape
    assert jnp.allclose(out, ref, rtol=1e-3, atol=1e-3), (out, ref)

    # Exercise the tiled / padded multi-block path (grid > 1, batch on lanes).
    batch2 = 300
    x2 = jax.random.normal(k_x2, (batch2, SEQ_LENGTH, FEATURE_SIZE), jnp.float32)
    out2 = jax.block_until_ready(model_forward(x2, params, batch_tile=128))
    ref2 = reference_forward(x2, raw)
    assert out2.shape == (batch2,), out2.shape
    assert jnp.allclose(out2, ref2, rtol=1e-3, atol=1e-3), (out2, ref2)

    print("KERNEL_OK")
</pallas_src>

<mosaic_0001>
module attributes {stable_mosaic.version = 11 : i64} {
  func.func @_rnn_mlp_kernel(%arg0: i32, %arg1: memref<10x2xf32, #tpu.memory_space<vmem>>, %arg2: memref<100x10xf32, #tpu.memory_space<vmem>>, %arg3: memref<100x1xf32, #tpu.memory_space<vmem>>, %arg4: memref<20x20xf32, #tpu.memory_space<vmem>>, %arg5: memref<30x100xf32, #tpu.memory_space<vmem>>, %arg6: memref<30x1xf32, #tpu.memory_space<vmem>>, %arg7: memref<1x30xf32, #tpu.memory_space<vmem>>, %arg8: memref<1x1xf32, #tpu.memory_space<vmem>>, %arg9: memref<1x2xf32, #tpu.memory_space<vmem>>) attributes {dimension_semantics = [#tpu.dimension_semantics<parallel>], iteration_bounds = array<i64: 1>, scalar_prefetch = 0 : i64, scratch_operands = 0 : i64, tpu.core_type = #tpu.core_type<tc>, window_params = [{transform_indices = @transform_0, window_bounds = array<i64: 10, 2>}, {pipeline_mode = #tpu.pipeline_mode<synchronous>, transform_indices = @transform_1, window_bounds = array<i64: 100, 10>}, {pipeline_mode = #tpu.pipeline_mode<synchronous>, transform_indices = @transform_2, window_bounds = array<i64: 100, 1>}, {pipeline_mode = #tpu.pipeline_mode<synchronous>, transform_indices = @transform_3, window_bounds = array<i64: 20, 20>}, {pipeline_mode = #tpu.pipeline_mode<synchronous>, transform_indices = @transform_4, window_bounds = array<i64: 30, 100>}, {pipeline_mode = #tpu.pipeline_mode<synchronous>, transform_indices = @transform_5, window_bounds = array<i64: 30, 1>}, {pipeline_mode = #tpu.pipeline_mode<synchronous>, transform_indices = @transform_6, window_bounds = array<i64: 1, 30>}, {pipeline_mode = #tpu.pipeline_mode<synchronous>, transform_indices = @transform_7, window_bounds = array<i64: 1, 1>}, {transform_indices = @transform_8, window_bounds = array<i64: 1, 2>}]} {
    %c0 = arith.constant 0 : index
    %c0_0 = arith.constant 0 : index
    %0 = vector.load %arg1[%c0, %c0_0] : memref<10x2xf32, #tpu.memory_space<vmem>>, vector<10x2xf32>
    %c0_1 = arith.constant 0 : index
    %c0_2 = arith.constant 0 : index
    %1 = vector.load %arg2[%c0_1, %c0_2] : memref<100x10xf32, #tpu.memory_space<vmem>>, vector<100x10xf32>
    %cst = arith.constant dense<0.000000e+00> : vector<100x2xf32>
    %2 = tpu.matmul %1, %0, %cst {dimension_numbers = #tpu.dot_dimension_numbers<[1], [0], [0], [1], [0, 0, 1, 1], [], []>} : vector<100x10xf32>, vector<10x2xf32>, vector<100x2xf32> -> vector<100x2xf32>
    %c0_3 = arith.constant 0 : index
    %c0_4 = arith.constant 0 : index
    %3 = vector.load %arg3[%c0_3, %c0_4] : memref<100x1xf32, #tpu.memory_space<vmem>>, vector<100x1xf32>
    %4 = vector.broadcast %3 : vector<100x1xf32> to vector<100x2xf32>
    %5 = arith.addf %2, %4 : vector<100x2xf32>
    %c0_5 = arith.constant 0 : index
    %c0_6 = arith.constant 0 : index
    %6 = vector.load %arg4[%c0_5, %c0_6] : memref<20x20xf32, #tpu.memory_space<vmem>>, vector<20x20xf32>
    %c0_7 = arith.constant 0 : index
    %c0_8 = arith.constant 0 : index
    %7 = vector.load %arg5[%c0_7, %c0_8] : memref<30x100xf32, #tpu.memory_space<vmem>>, vector<30x100xf32>
    %cst_9 = arith.constant 0.000000e+00 : f32
    %8 = vector.broadcast %cst_9 : f32 to vector<20x2xf32>
    %c0_10 = arith.constant 0 : index
    %c0_11 = arith.constant 0 : index
    %9 = vector.load %arg6[%c0_10, %c0_11] : memref<30x1xf32, #tpu.memory_space<vmem>>, vector<30x1xf32>
    %10 = vector.shape_cast %9 : vector<30x1xf32> to vector<30x1xf32>
    %11 = vector.broadcast %10 : vector<30x1xf32> to vector<30x2xf32>
    %12 = vector.extract_strided_slice %5 {offsets = [0, 0], sizes = [20, 2], strides = [1, 1]} : vector<100x2xf32> to vector<20x2xf32>
    %cst_12 = arith.constant dense<0.000000e+00> : vector<20x2xf32>
    %13 = tpu.matmul %6, %8, %cst_12 {dimension_numbers = #tpu.dot_dimension_numbers<[1], [0], [0], [1], [0, 0, 1, 1], [], []>} : vector<20x20xf32>, vector<20x2xf32>, vector<20x2xf32> -> vector<20x2xf32>
    %14 = arith.addf %12, %13 : vector<20x2xf32>
    %15 = math.tanh %14 : vector<20x2xf32>
    %16 = vector.extract_strided_slice %7 {offsets = [0, 0], sizes = [30, 20], strides = [1, 1]} : vector<30x100xf32> to vector<30x20xf32>
    %cst_13 = arith.constant dense<0.000000e+00> : vector<30x2xf32>
    %17 = tpu.matmul %16, %15, %cst_13 {dimension_numbers = #tpu.dot_dimension_numbers<[1], [0], [0], [1], [0, 0, 1, 1], [], []>} : vector<30x20xf32>, vector<20x2xf32>, vector<30x2xf32> -> vector<30x2xf32>
    %18 = arith.addf %11, %17 : vector<30x2xf32>
    %19 = vector.extract_strided_slice %5 {offsets = [20, 0], sizes = [20, 2], strides = [1, 1]} : vector<100x2xf32> to vector<20x2xf32>
    %cst_14 = arith.constant dense<0.000000e+00> : vector<20x2xf32>
    %20 = tpu.matmul %6, %15, %cst_14 {dimension_numbers = #tpu.dot_dimension_numbers<[1], [0], [0], [1], [0, 0, 1, 1], [], []>} : vector<20x20xf32>, vector<20x2xf32>, vector<20x2xf32> -> vector<20x2xf32>
    %21 = arith.addf %19, %20 : vector<20x2xf32>
    %22 = math.tanh %21 : vector<20x2xf32>
    %23 = vector.extract_strided_slice %7 {offsets = [0, 20], sizes = [30, 20], strides = [1, 1]} : vector<30x100xf32> to vector<30x20xf32>
    %cst_15 = arith.constant dense<0.000000e+00> : vector<30x2xf32>
    %24 = tpu.matmul %23, %22, %cst_15 {dimension_numbers = #tpu.dot_dimension_numbers<[1], [0], [0], [1], [0, 0, 1, 1], [], []>} : vector<30x20xf32>, vector<20x2xf32>, vector<30x2xf32> -> vector<30x2xf32>
    %25 = arith.addf %18, %24 : vector<30x2xf32>
    %26 = vector.extract_strided_slice %5 {offsets = [40, 0], sizes = [20, 2], strides = [1, 1]} : vector<100x2xf32> to vector<20x2xf32>
    %cst_16 = arith.constant dense<0.000000e+00> : vector<20x2xf32>
    %27 = tpu.matmul %6, %22, %cst_16 {dimension_numbers = #tpu.dot_dimension_numbers<[1], [0], [0], [1], [0, 0, 1, 1], [], []>} : vector<20x20xf32>, vector<20x2xf32>, vector<20x2xf32> -> vector<20x2xf32>
    %28 = arith.addf %26, %27 : vector<20x2xf32>
    %29 = math.tanh %28 : vector<20x2xf32>
    %30 = vector.extract_strided_slice %7 {offsets = [0, 40], sizes = [30, 20], strides = [1, 1]} : vector<30x100xf32> to vector<30x20xf32>
    %cst_17 = arith.constant dense<0.000000e+00> : vector<30x2xf32>
    %31 = tpu.matmul %30, %29, %cst_17 {dimension_numbers = #tpu.dot_dimension_numbers<[1], [0], [0], [1], [0, 0, 1, 1], [], []>} : vector<30x20xf32>, vector<20x2xf32>, vector<30x2xf32> -> vector<30x2xf32>
    %32 = arith.addf %25, %31 : vector<30x2xf32>
    %33 = vector.extract_strided_slice %5 {offsets = [60, 0], sizes = [20, 2], strides = [1, 1]} : vector<100x2xf32> to vector<20x2xf32>
    %cst_18 = arith.constant dense<0.000000e+00> : vector<20x2xf32>
    %34 = tpu.matmul %6, %29, %cst_18 {dimension_numbers = #tpu.dot_dimension_numbers<[1], [0], [0], [1], [0, 0, 1, 1], [], []>} : vector<20x20xf32>, vector<20x2xf32>, vector<20x2xf32> -> vector<20x2xf32>
    %35 = arith.addf %33, %34 : vector<20x2xf32>
    %36 = math.tanh %35 : vector<20x2xf32>
    %37 = vector.extract_strided_slice %7 {offsets = [0, 60], sizes = [30, 20], strides = [1, 1]} : vector<30x100xf32> to vector<30x20xf32>
    %cst_19 = arith.constant dense<0.000000e+00> : vector<30x2xf32>
    %38 = tpu.matmul %37, %36, %cst_19 {dimension_numbers = #tpu.dot_dimension_numbers<[1], [0], [0], [1], [0, 0, 1, 1], [], []>} : vector<30x20xf32>, vector<20x2xf32>, vector<30x2xf32> -> vector<30x2xf32>
    %39 = arith.addf %32, %38 : vector<30x2xf32>
    %40 = vector.extract_strided_slice %5 {offsets = [80, 0], sizes = [20, 2], strides = [1, 1]} : vector<100x2xf32> to vector<20x2xf32>
    %cst_20 = arith.constant dense<0.000000e+00> : vector<20x2xf32>
    %41 = tpu.matmul %6, %36, %cst_20 {dimension_numbers = #tpu.dot_dimension_numbers<[1], [0], [0], [1], [0, 0, 1, 1], [], []>} : vector<20x20xf32>, vector<20x2xf32>, vector<20x2xf32> -> vector<20x2xf32>
    %42 = arith.addf %40, %41 : vector<20x2xf32>
    %43 = math.tanh %42 : vector<20x2xf32>
    %44 = vector.extract_strided_slice %7 {offsets = [0, 80], sizes = [30, 20], strides = [1, 1]} : vector<30x100xf32> to vector<30x20xf32>
    %cst_21 = arith.constant dense<0.000000e+00> : vector<30x2xf32>
    %45 = tpu.matmul %44, %43, %cst_21 {dimension_numbers = #tpu.dot_dimension_numbers<[1], [0], [0], [1], [0, 0, 1, 1], [], []>} : vector<30x20xf32>, vector<20x2xf32>, vector<30x2xf32> -> vector<30x2xf32>
    %46 = arith.addf %39, %45 : vector<30x2xf32>
    %cst_22 = arith.constant 0.000000e+00 : f32
    %47 = vector.broadcast %cst_22 : f32 to vector<30x2xf32>
    %48 = arith.maximumf %46, %47 : vector<30x2xf32>
    %c0_23 = arith.constant 0 : index
    %c0_24 = arith.constant 0 : index
    %49 = vector.load %arg7[%c0_23, %c0_24] : memref<1x30xf32, #tpu.memory_space<vmem>>, vector<1x30xf32>
    %cst_25 = arith.constant dense<0.000000e+00> : vector<1x2xf32>
    %50 = tpu.matmul %49, %48, %cst_25 {dimension_numbers = #tpu.dot_dimension_numbers<[1], [0], [0], [1], [0, 0, 1, 1], [], []>} : vector<1x30xf32>, vector<30x2xf32>, vector<1x2xf32> -> vector<1x2xf32>
    %c0_26 = arith.constant 0 : index
    %c0_27 = arith.constant 0 : index
    %51 = vector.load %arg8[%c0_26, %c0_27] : memref<1x1xf32, #tpu.memory_space<vmem>>, vector<1x1xf32>
    %52 = vector.broadcast %51 : vector<1x1xf32> to vector<1x2xf32>
    %53 = arith.addf %50, %52 : vector<1x2xf32>
    %c0_28 = arith.constant 0 : index
    %c0_29 = arith.constant 0 : index
    %54 = vector.load %arg9[%c0_28, %c0_29] : memref<1x2xf32, #tpu.memory_space<vmem>>, vector<1x2xf32>
    tpu.vector_store %arg9[%c0_28, %c0_29], %53 {strides = array<i32>} : memref<1x2xf32, #tpu.memory_space<vmem>>, vector<1x2xf32>,
    return
  }
  func.func @transform_0(%arg0: i32) -> (i32, i32) {
    %c0_i32 = arith.constant 0 : i32
    %c0_i32_0 = arith.constant 0 : i32
    return %c0_i32, %arg0 : i32, i32
  }
  func.func @transform_1(%arg0: i32) -> (i32, i32) {
    %c0_i32 = arith.constant 0 : i32
    %c0_i32_0 = arith.constant 0 : i32
    %c0_i32_1 = arith.constant 0 : i32
    return %c0_i32, %c0_i32_0 : i32, i32
  }
  func.func @transform_2(%arg0: i32) -> (i32, i32) {
    %c0_i32 = arith.constant 0 : i32
    %c0_i32_0 = arith.constant 0 : i32
    %c0_i32_1 = arith.constant 0 : i32
    return %c0_i32, %c0_i32_0 : i32, i32
  }
  func.func @transform_3(%arg0: i32) -> (i32, i32) {
    %c0_i32 = arith.constant 0 : i32
    %c0_i32_0 = arith.constant 0 : i32
    %c0_i32_1 = arith.constant 0 : i32
    return %c0_i32, %c0_i32_0 : i32, i32
  }
  func.func @transform_4(%arg0: i32) -> (i32, i32) {
    %c0_i32 = arith.constant 0 : i32
    %c0_i32_0 = arith.constant 0 : i32
    %c0_i32_1 = arith.constant 0 : i32
    return %c0_i32, %c0_i32_0 : i32, i32
  }
  func.func @transform_5(%arg0: i32) -> (i32, i32) {
    %c0_i32 = arith.constant 0 : i32
    %c0_i32_0 = arith.constant 0 : i32
    %c0_i32_1 = arith.constant 0 : i32
    return %c0_i32, %c0_i32_0 : i32, i32
  }
  func.func @transform_6(%arg0: i32) -> (i32, i32) {
    %c0_i32 = arith.constant 0 : i32
    %c0_i32_0 = arith.constant 0 : i32
    %c0_i32_1 = arith.constant 0 : i32
    return %c0_i32, %c0_i32_0 : i32, i32
  }
  func.func @transform_7(%arg0: i32) -> (i32, i32) {
    %c0_i32 = arith.constant 0 : i32
    %c0_i32_0 = arith.constant 0 : i32
    %c0_i32_1 = arith.constant 0 : i32
    return %c0_i32, %c0_i32_0 : i32, i32
  }
  func.func @transform_8(%arg0: i32) -> (i32, i32) {
    %c0_i32 = arith.constant 0 : i32
    %c0_i32_0 = arith.constant 0 : i32
    return %c0_i32, %arg0 : i32, i32
  }
}

</mosaic_0001>

<bundles_post_ra>
// kernel: model_forward.1
= control target key start
LH: loop header
LB: loop body
LE: loop exit
PB: predicated region body
PF: predicated region fallthrough
CT: control target
= control target key end

     0   :  { %s2322_s0 = inlined_call_operand.vmem [shape: f32[10,2], index: 0, kind: input, shape index: {}]   ;;  %s2323_s1 = inlined_call_operand.vmem [shape: f32[100,10], index: 1, kind: input, shape index: {}]   ;;  %s2324_s2 = inlined_call_operand.vmem [shape: f32[100,1], index: 2, kind: input, shape index: {}]   ;;  %s2325_s3 = inlined_call_operand.vmem [shape: f32[20,20], index: 3, kind: input, shape index: {}]   ;;  %s2326_s4 = inlined_call_operand.vmem [shape: f32[30,100], index: 4, kind: input, shape index: {}]   ;;  %s2327_s5 = inlined_call_operand.vmem [shape: f32[30,1], index: 5, kind: input, shape index: {}]   ;;  %s2328_s6 = inlined_call_operand.vmem [shape: f32[1,30], index: 6, kind: input, shape index: {}]   ;;  %s2329_s7 = inlined_call_operand.<no memory space> [shape: f32[1,1], index: 7, kind: input, shape index: {}]   ;;  %s2330_s8 = inlined_call_operand.hbm [shape: f32[1,2], index: 8, kind: output, shape index: {}]  }
   0x1   :  { %v13_v0 = vstv %s2329_s7 }
   0x2   :  { %14 = vst [vmem:[#allocation2] sm:$0x1] %v13_v0 }
   0x3   :  { %v32_v1 = vld [vmem:[%s2322_s0] sm:$0xff]  ;;  %v33_v2 = vld [vmem:[%s2322_s0 + $0x8] sm:$0x3]  ;;  %vm165_vm0 = vcmask 1041408   ;;  %v1935_v3 = vmov 0.0|0.0   ;;  %vm1936_vm1 = vmmov 1  }
   0x4   :  { %1787 = vmatprep.subr.bf16.mxu0 %v1935_v3  ;;  %v1788_v4 = vpack.c.bf16 %v33_v2, %v32_v1  ;;  %vm1789_vm2 = vmpackc.low %vm165_vm0, %vm1936_vm1  ;;  %vm1937_vm3 = vmmov 0   ;;  %v1938_v5 = vmov 0.0   ;;  %v2007_v6 = vld [vmem:[%s2325_s3] sm:$0xff]  ;;  %vm330_vm4 = vcmask 162816   ;;  %v2026_v10 = vld [vmem:[%s2325_s3 + $0x8] sm:$0xff] }
   0x5   :  { %1606 = vmatprep.mubr.msk.f32.mxu0 %vm1937_vm3, %v1938_v5  ;;  %1645 = vmatprep.subr.mxu1 %v1938_v5  ;;  %v34_v7 = vld [vmem:[%s2323_s1] sm:$0xff]  ;;  %vm125_vm5 = vcmask 80896   ;;  %v1939_v8 = vmov 0   ;;  %v48_v11 = vld [vmem:[%s2324_s2 + $0x8] sm:$0xff]  ;;  %v49_v12 = vld [vmem:[%s2324_s2 + $0x10] sm:$0xff] }
   0x6   :  { %1790 = vmatpush3.bf16.msk.msra.mxu0 %vm1789_vm2, %v1788_v4  ;;  %1646 = vmatpush3.msra.mxu1 %v1938_v5  ;;  %v47_v9 = vld [vmem:[%s2324_s2] sm:$0xff]  ;;  %v35_v13 = vld [vmem:[%s2323_s1 + $0x8] sm:$0xff]  ;;  %v50_v14 = vld [vmem:[%s2324_s2 + $0x18] sm:$0xff] }
   0x7   :  { %1647 = vmatprep.mubr.msk.f32.mxu1 %vm1937_vm3, %v1938_v5  ;;  %1879 = vset.pattern.permute.xlu0 %v1939_v8  ;;  %v2051_v15 = vld [vmem:[%s2325_s3 + $0x10] sm:$0xf]  ;;  %v51_v16 = vld [vmem:[%s2324_s2 + $0x20] sm:$0xff]  ;;  %v52_v19 = vld [vmem:[%s2324_s2 + $0x28] sm:$0xff] }
   0x8   :  { %1648 = vmatmul.mubr.msk.f32.vlgmr.msra.gmra.mrb[0].mxu1 %vm330_vm4, %v2007_v6  ;;  %62 = vperm.xlu0 %1879, %v47_v9   ;;  %v36_v17 = vld [vmem:[%s2323_s1 + $0x10] sm:$0xff]  ;;  %v302_v18 = vld [vmem:[%s2326_s4] sm:$0xff] }
   0x9   :  { %1607 = vmatmul.mubr.msk.f32.vlgmr.msra.gmra.mrb[0].mxu0 %vm125_vm5, %v34_v7  ;;  %1650 = vmatprep.mubr.msk.f32.mxu1 %vm1937_vm3, %v1938_v5 }
   0xa   :  { %1609 = vmatprep.mubr.msk.f32.mxu0 %vm1937_vm3, %v1938_v5  ;;  %1880 = vset.pattern.permute.xlu1 %v1939_v8 }
   0xb   :  { %72 = vperm.xlu1 %1880, %v49_v12   ;;  %1802 = vmatprep.subr.bf16.mxu0 %v1935_v3 }
   0xc   :  { %1651 = vmatmul.mubr.msk.f32.gmra.mrb[2].mxu1 %vm330_vm4, %v2026_v10  ;;  %67 = vperm.xlu0 %1879, %v48_v11  }
   0xd   :  { %1610 = vmatmul.mubr.msk.f32.gmra.mrb[2].mxu0 %vm125_vm5, %v35_v13  ;;  %1653 = vmatprep.mubr.msk.f32.mxu1 %vm1937_vm3, %v1938_v5 }
   0xe   :  { %1612 = vmatprep.mubr.msk.f32.mxu0 %vm1937_vm3, %v1938_v5 }
   0xf   :  { %77 = vperm.xlu1 %1880, %v50_v14  }
  0x10   :  { %1654 = vmatmul.mubr.msk.f32.gmra.mrb[4].mxu1 %vm330_vm4, %v2051_v15  ;;  %82 = vperm.xlu0 %1879, %v51_v16  }
  0x11   :  { %15 = vsyncpa [#allocation4], 0  ;;  %1613 = vmatmul.mubr.msk.f32.gmra.mrb[4].mxu0 %vm125_vm5, %v36_v17  ;;  %v53_v20 = vld [vmem:[%s2324_s2 + $0x30] sm:$0xff]  ;;  %1662 = vmatprep.mubr.msk.f32.mxu1 %vm330_vm4, %v302_v18  ;;  %v37_v21 = vld [vmem:[%s2323_s1 + $0x18] sm:$0xff]  ;;  %s1940_s18 = smov 108   ;;  %s1941_s29 = smov 88  }
  0x12   :  { %1615 = vmatprep.mubr.msk.f32.mxu0 %vm1937_vm3, %v1938_v5  ;;  %v54_v22 = vld [vmem:[%s2324_s2 + $0x38] sm:$0xff]  ;;  %v38_v23 = vld [vmem:[%s2323_s1 + $0x20] sm:$0xff]  ;;  %v2091_v24 = vld [vmem:[%s2326_s4 + $0x8] sm:$0xff]  ;;  %s1942_s20 = smov 68   ;;  %s1943_s21 = smov 48   ;;  %vm340_vm6 = vcmask 1043456  }
  0x13   :  { %87 = vperm.xlu1 %1880, %v52_v19   ;;  %v2097_v25 = vld [vmem:[%s2326_s4 + $0x10] sm:$0xff]  ;;  %v39_v26 = vld [vmem:[%s2323_s1 + $0x28] sm:$0xff]  ;;  %v2109_v27 = vld [vmem:[%s2326_s4 + $0x18] sm:$0x3f]  ;;  %vm1369_vm7 = vcmask 1045504   ;;  %vm1365_vm9 = vcmask 244736  }
  0x14   :  { %92 = vperm.xlu0 %1879, %v53_v20   ;;  %v40_v28 = vld [vmem:[%s2323_s1 + $0x30] sm:$0xff]  ;;  %v41_v29 = vld [vmem:[%s2323_s1 + $0x38] sm:$0xff]  ;;  %v55_v30 = vld [vmem:[%s2324_s2 + $0x40] sm:$0xff]  ;;  %s1944_s7 = smov [#allocation3]   ;;  %vm1443_vm10 = vcmask 8192  }
  0x15   :  { %1616 = vmatmul.mubr.msk.f32.gmra.mrb[6].mxu0 %vm125_vm5, %v37_v21  ;;  %v42_v31 = vld [vmem:[%s2323_s1 + $0x40] sm:$0xff]  ;;  %v56_v32 = vld [vmem:[%s2324_s2 + $0x48] sm:$0xff]  ;;  %v57_v33 = vld [vmem:[%s2324_s2 + $0x50] sm:$0xff]  ;;  %s1451_s11 = sshll.u32 %s1944_s7, 4  ;;  %s1452_s11 = int_to_ptr.vmem [resolvable:$true] %s1451_s11 }
  0x16   :  { %1618 = vmatprep.mubr.msk.f32.mxu0 %vm1937_vm3, %v1938_v5  ;;  %v43_v34 = vld [vmem:[%s2323_s1 + $0x48] sm:$0xff]  ;;  %v58_v35 = vld [vmem:[%s2324_s2 + $0x58] sm:$0xff]  ;;  %v59_v36 = vld [vmem:[%s2324_s2 + $0x60] sm:$0xf]  ;;  %s1911_s0 = scalar_lea.vmem %s1452_s11, 16  ;;  %s1915_s12 = scalar_lea.vmem %s1452_s11, 32 }
  0x17   :  { %97 = vperm.xlu1 %1880, %v54_v22   ;;  %v306_v37 = vld [vmem:[%s2327_s5] sm:$0xff]  ;;  %v307_v38 = vld [vmem:[%s2327_s5 + $0x8] sm:$0xff]  ;;  %v308_v39 = vld [vmem:[%s2327_s5 + $0x10] sm:$0xff]  ;;  %p1912_p0 = scmp.ne.s32.totalorder %s1452_s11, %s1911_s0  ;;  %p1916_p1 = scmp.lt.s32.totalorder %s1452_s11, %s1452_s11 }
  0x18   :  { %631 = vrot.lane.b32.xlu0 %v302_v18, %s1940_s18  ;;  %v309_v40 = vld [vmem:[%s2327_s5 + $0x18] sm:$0x3f]  ;;  %v1355_v41 = vld [vmem:[#allocation2] sm:$0x1]  ;;  %v44_v21 = vld [vmem:[%s2323_s1 + $0x50] sm:$0xff]  ;;  %p1917_p2 = scmp.lt.s32.totalorder %s1915_s12, %s1911_s0 }
  0x19   :  { %1619 = vmatmul.mubr.msk.f32.gmra.mrb[8].mxu0 %vm125_vm5, %v38_v23  ;;  %v45_v22 = vld [vmem:[%s2323_s1 + $0x58] sm:$0xff]  ;;  %v46_v23 = vld [vmem:[%s2323_s1 + $0x60] sm:$0xf]  ;;  %vm1828_vm8 = vmpackc.low %vm1369_vm7, %vm1936_vm1 }
  0x1a   :  { %1621 = vmatprep.mubr.msk.f32.mxu0 %vm1937_vm3, %v1938_v5  ;;  %p1918_p3 = por %p1917_p2, %p1916_p1 }
  0x1b   :  { %633 = vrot.lane.b32.xlu1 %v2091_v24, %s1940_s18 }
  0x1c   :  { %635 = vrot.lane.b32.xlu0 %v2097_v25, %s1940_s18  ;;  %p1919_p4 = pnand %p1918_p3, %p1912_p0 }
  0x1d   :  { %1622 = vmatmul.mubr.msk.f32.gmra.mrb[10].mxu0 %vm125_vm5, %v39_v26 }
  0x1e   :  { %1624 = vmatprep.mubr.msk.f32.mxu0 %vm1937_vm3, %v1938_v5 }
  0x1f   :  { %637 = vrot.lane.b32.xlu1 %v2109_v27, %s1940_s18 }
  0x20   :  { %834 = vrot.lane.b32.xlu0 %v302_v18, %s1941_s29 }
  0x21   :  { %1625 = vmatmul.mubr.msk.f32.gmra.mrb[12].mxu0 %vm125_vm5, %v40_v28 }
  0x22   :  { %1627 = vmatprep.mubr.msk.f32.mxu0 %vm1937_vm3, %v1938_v5 }
  0x23   :  { %836 = vrot.lane.b32.xlu1 %v2091_v24, %s1941_s29 }
  0x24   :  { %838 = vrot.lane.b32.xlu0 %v2097_v25, %s1941_s29 }
  0x25   :  { %1628 = vmatmul.mubr.msk.f32.gmra.mrb[14].mxu0 %vm125_vm5, %v41_v29 }
  0x26   :  { %1630 = vmatprep.mubr.msk.f32.mxu0 %vm1937_vm3, %v1938_v5 }
  0x27   :  { %840 = vrot.lane.b32.xlu1 %v2109_v27, %s1941_s29 }
  0x28   :  { %102 = vperm.xlu0 %1879, %v55_v30  }
  0x29   :  { %1631 = vmatmul.mubr.msk.f32.gmra.mrb[16].mxu0 %vm125_vm5, %v42_v31 }
  0x2a   :  { %1633 = vmatprep.mubr.msk.f32.mxu0 %vm1937_vm3, %v1938_v5 }
  0x2b   :  { %107 = vperm.xlu1 %1880, %v56_v32  }
  0x2c   :  { %112 = vperm.xlu0 %1879, %v57_v33  }
  0x2d   :  { %1634 = vmatmul.mubr.msk.f32.gmra.mrb[18].mxu0 %vm125_vm5, %v43_v34 }
  0x2e   :  { %1636 = vmatprep.mubr.msk.f32.mxu0 %vm1937_vm3, %v1938_v5 }
  0x2f   :  { %117 = vperm.xlu1 %1880, %v58_v35  }
  0x30   :  { %122 = vperm.xlu0 %1879, %v59_v36  }
  0x31   :  { %1637 = vmatmul.mubr.msk.f32.gmra.mrb[20].mxu0 %vm125_vm5, %v44_v21 }
  0x32   :  { %1639 = vmatprep.mubr.msk.f32.mxu0 %vm1937_vm3, %v1938_v5 }
  0x33   :  { %1039 = vrot.lane.b32.xlu1 %v302_v18, %s1942_s20 }
  0x34   :  { %1041 = vrot.lane.b32.xlu0 %v2091_v24, %s1942_s20 }
  0x35   :  { %1640 = vmatmul.mubr.msk.f32.gmra.mrb[22].mxu0 %vm125_vm5, %v45_v22 }
  0x36   :  { %1642 = vmatprep.mubr.msk.f32.mxu0 %vm1937_vm3, %v1938_v5 }
  0x37   :  { %1043 = vrot.lane.b32.xlu1 %v2097_v25, %s1942_s20 }
  0x38   :  { %1045 = vrot.lane.b32.xlu0 %v2109_v27, %s1942_s20 }
  0x39   :  { %1643 = vmatmul.mubr.msk.f32.gmra.mrb[24].mxu0 %vm125_vm5, %v46_v23 }
  0x3a   :  { %1701 = vmatprep.mubr.msk.f32.mxu0 %vm1937_vm3, %v1938_v5 }
  0x3b   :  { %1242 = vrot.lane.b32.xlu1 %v302_v18, %s1943_s21 }
  0x3c   :  { %1244 = vrot.lane.b32.xlu0 %v2091_v24, %s1943_s21 }
  0x3f   :  { %1246 = vrot.lane.b32.xlu1 %v2097_v25, %s1943_s21 }
  0x40   :  { %1248 = vrot.lane.b32.xlu0 %v2109_v27, %s1943_s21 }
  0x43   :  { %312 = vperm.xlu1 %1880, %v306_v37  }
  0x44   :  { %317 = vperm.xlu0 %1879, %v307_v38  }
  0x47   :  { %322 = vperm.xlu1 %1880, %v308_v39  }
  0x48   :  { %327 = vperm.xlu0 %1879, %v309_v40  }
  0x4b   :  { %1358 = vperm.xlu1 %1880, %v1355_v41  }
  0x87   :  { %v63_v42 = vpop.permute.xlu0 %62 }
  0x8a   :  { %v73_v55 = vpop.permute.xlu1 %72 }
  0x8b   :  { %v68_v48 = vpop.permute.xlu0 %67 }
  0x8e   :  { %v78_v29 = vpop.permute.xlu1 %77 }
  0x8f   :  { %v83_v13 = vpop.permute.xlu0 %82 }
  0x93   :  { %v2198_v19 = vpop.permute.xlu0 %92 }
  0x97   :  { %v632_v20 = vpop.permute.xlu0 %631 }
  0xdb   :  { %v410_v43 = vpop.f32.mrb[0].mxu1 }
  0xdc   :  { %v235_v44 = vpop.f32.mrb[0].mxu0  ;;  %v1649_v45 = vpop.f32.mrb[1].mxu1 }
  0xdd   :  { %v236_v46 = vadd.f32 %v235_v44, %v63_v42  ;;  %v1608_v47 = vpop.f32.mrb[1].mxu0 }
  0xdf   :  { %v424_v49 = vadd.f32 %v410_v43, %v236_v46  ;;  %v415_v50 = vpop.f32.mrb[2].mxu1  ;;  %v88_v43 = vpop.permute.xlu1 %87 }
  0xe0   :  { %v240_v51 = vpop.f32.mrb[2].mxu0  ;;  %v1652_v52 = vpop.f32.mrb[3].mxu1 }
  0xe1   :  { %v241_v53 = vadd.f32 %v240_v51, %v68_v48  ;;  %v1611_v54 = vpop.f32.mrb[3].mxu0  ;;  %1881 = vtanh.f32 %v424_v49 }
  0xe3   :  { %v425_v56 = vadd.f32 %v415_v50, %v241_v53  ;;  %v420_v57 = vpop.f32.mrb[4].mxu1  ;;  %v98_v49 = vpop.permute.xlu1 %97 }
  0xe4   :  { %v245_v58 = vpop.f32.mrb[4].mxu0  ;;  %v1655_v59 = vpop.f32.mrb[5].mxu1 }
  0xe5   :  { %1883 = vtanh.f32 %v425_v56  ;;  %v246_v60 = vadd.f32 %v245_v58, %v73_v55  ;;  %v1614_v61 = vpop.f32.mrb[5].mxu0  ;;  %v636_v53 = vpop.permute.xlu0 %635 }
  0xe7   :  { %v426_v62 = vadd.f32 %v420_v57, %v246_v60  ;;  %v634_v52 = vpop.permute.xlu1 %633 }
  0xe8   :  { %v250_v63 = vpop.f32.mrb[6].mxu0 }
  0xe9   :  { %1885 = vtanh.f32 %v426_v62  ;;  %v1617_v0 = vpop.f32.mrb[7].mxu0  ;;  %v251_v32 = vadd.f32 %v250_v63, %v78_v29  ;;  %v835_v55 = vpop.permute.xlu0 %834 }
  0xeb   :  { %v1882_v4 = vpop.eup %1881  ;;  %v638_v54 = vpop.permute.xlu1 %637 }
  0xec   :  { %v255_v1 = vpop.f32.mrb[8].mxu0 }
  0xed   :  { %v1620_v2 = vpop.f32.mrb[9].mxu0  ;;  %v256_v38 = vadd.f32 %v255_v1, %v83_v13  ;;  %v839_v13 = vpop.permute.xlu0 %838 }
  0xef   :  { %v1884_v7 = vpop.eup %1883 }
  0xf0   :  { %v1791_v8 = vpack.c.bf16 %v1884_v7, %v1882_v4  ;;  %v837_v7 = vpop.permute.xlu1 %836 }
  0xf2   :  { %1792 = vmatprep.subr.bf16.mxu1 %v1791_v8 }
  0xf3   :  { %v1886_v9 = vpop.eup %1885  ;;  %1794 = vmatpush3.bf16.msra.mxu1 %v1791_v8 }
  0xf4   :  { %1660 = vmatprep.subr.msk.mxu1 %vm340_vm6, %v1886_v9 }
  0xf7   :  { %1661 = vmatpush3.msk.msra.mxu1 %vm340_vm6, %v1886_v9 }
  0xf8   :  { %v2177_v11 = vpop.f32.mrb[14].mxu0  ;;  %1663 = vmatmul.mubr.msk.f32.vlgmr.msra.gmra.mrb[6].mxu1 %vm330_vm4, %v2091_v24  ;;  %1795 = vmatprep.subr.bf16.mxu1 %v1935_v3 }
  0xf9   :  { %1797 = vmatpush3.bf16.msra.mxu1 %v1791_v8  ;;  %v1629_v12 = vpop.f32.mrb[15].mxu0  ;;  %1665 = vmatprep.mubr.msk.f32.mxu1 %vm330_vm4, %v2097_v25  ;;  %v271_v62 = vadd.f32 %v2177_v11, %v98_v49 }
  0xfa   :  { %1672 = vmatprep.subr.mxu1 %v1938_v5  ;;  %v841_v12 = vpop.permute.xlu1 %840 }
  0xfc   :  { %v2185_v14 = vpop.f32.mrb[16].mxu0  ;;  %1666 = vmatmul.mubr.msk.f32.gmra.mrb[8].mxu1 %vm330_vm4, %v2109_v27 }
  0xfd   :  { %1673 = vmatpush3.msk.msra.mxu1 %vm340_vm6, %v1886_v9  ;;  %v1632_v16 = vpop.f32.mrb[17].mxu0  ;;  %1674 = vmatprep.mubr.msk.f32.mxu1 %vm1937_vm3, %v1938_v5 }
  0xfe   :  { %v108_v11 = vpop.permute.xlu1 %107 }
 0x100   :  { %v2192_v17 = vpop.f32.mrb[18].mxu0  ;;  %1675 = vmatmul.mubr.msk.f32.vlgmr.msra.gmra.mrb[10].mxu1 %vm330_vm4, %v2007_v6 }
 0x101   :  { %1677 = vmatprep.mubr.msk.f32.mxu1 %vm1937_vm3, %v1938_v5  ;;  %v1635_v18 = vpop.f32.mrb[19].mxu0 }
 0x102   :  { %v118_v16 = vpop.permute.xlu1 %117 }
 0x104   :  { %1678 = vmatmul.mubr.msk.f32.gmra.mrb[12].mxu1 %vm330_vm4, %v2026_v10 }
 0x105   :  { %1680 = vmatprep.mubr.msk.f32.mxu1 %vm1937_vm3, %v1938_v5 }
 0x106   :  { %v1040_v18 = vpop.permute.xlu1 %1039 }
 0x108   :  { %1681 = vmatmul.mubr.msk.f32.gmra.mrb[14].mxu1 %vm330_vm4, %v2051_v15 }
 0x109   :  { %1689 = vmatprep.mubr.msk.f32.mxu1 %vm330_vm4, %v632_v20 }
 0x1d3   :  { %v600_v24 = vpop.f32.mrb[10].mxu1 }
 0x1d4   :  { %v617_v25 = vrot.slane %v600_v24, 4  ;;  %v1676_v26 = vpop.f32.mrb[11].mxu1  ;;  %v103_v24 = vpop.permute.xlu0 %102 }
 0x1d6   :  { %v625_v27 = vadd.f32 %v617_v25, %v246_v60 }
 0x1d7   :  { %v605_v28 = vpop.f32.mrb[12].mxu1 }
 0x1d8   :  { %v618_v30 = vrot.slane %v605_v28, 4  ;;  %v1679_v31 = vpop.f32.mrb[13].mxu1  ;;  %1887 = vtanh.f32 %v625_v27  ;;  %v276_v27 = vadd.f32 %v2185_v14, %v103_v24 }
 0x1da   :  { %v619_v33 = vsel %vm340_vm6, %v617_v25, %v618_v30 }
 0x1db   :  { %v626_v34 = vadd.f32 %v619_v33, %v251_v32  ;;  %v610_v35 = vpop.f32.mrb[14].mxu1  ;;  %v281_v33 = vadd.f32 %v2192_v17, %v108_v11 }
 0x1dc   :  { %v620_v36 = vrot.slane %v610_v35, 4  ;;  %v1682_v37 = vpop.f32.mrb[15].mxu1 }
 0x1dd   :  { %1889 = vtanh.f32 %v626_v34 }
 0x1de   :  { %v621_v39 = vsel %vm340_vm6, %v618_v30, %v620_v36 }
 0x1df   :  { %v627_v40 = vadd.f32 %v621_v39, %v256_v38  ;;  %v113_v38 = vpop.permute.xlu0 %112 }
 0x1e1   :  { %1891 = vtanh.f32 %v627_v40 }
 0x1e2   :  { %v1888_v41 = vpop.eup %1887 }
 0x1e3   :  { %v642_v44 = vrot.slane %v1888_v41, 4 }
 0x1e7   :  { %v1890_v42 = vpop.eup %1889 }
 0x1e8   :  { %v643_v45 = vrot.slane %v1890_v42, 4 }
 0x1ea   :  { %v644_v46 = vsel %vm340_vm6, %v642_v44, %v643_v45 }
 0x1eb   :  { %v1892_v47 = vpop.eup %1891 }
 0x1ec   :  { %v645_v48 = vrot.slane %v1892_v47, 4 }
 0x1ee   :  { %v646_v50 = vsel %vm340_vm6, %v643_v45, %v645_v48 }
 0x1ef   :  { %v1798_v51 = vpack.c.bf16 %v646_v50, %v644_v46  ;;  %v1044_v46 = vpop.permute.xlu1 %1043 }
 0x1f1   :  { %1799 = vmatprep.subr.bf16.mxu1 %v1798_v51  ;;  %1804 = vmatpush3.bf16.msra.mxu0 %v1798_v51 }
 0x1f2   :  { %1801 = vmatpush3.bf16.msra.mxu1 %v1798_v51  ;;  %1699 = vmatprep.subr.mxu0 %v1938_v5 }
 0x1f3   :  { %1687 = vmatprep.subr.msk.mxu1 %vm340_vm6, %v645_v48 }
 0x1f5   :  { %1700 = vmatpush3.msk.msra.mxu0 %vm340_vm6, %v645_v48 }
 0x1f6   :  { %1688 = vmatpush3.msk.msra.mxu1 %vm340_vm6, %v645_v48  ;;  %1702 = vmatmul.mubr.msk.f32.vlgmr.msra.gmra.mrb[10].mxu0 %vm330_vm4, %v2007_v6  ;;  %v1243_v48 = vpop.permute.xlu1 %1242 }
 0x1f7   :  { %1704 = vmatprep.mubr.msk.f32.mxu0 %vm1937_vm3, %v1938_v5  ;;  %1690 = vmatmul.mubr.msk.f32.vlgmr.msra.gmra.mrb[6].mxu1 %vm330_vm4, %v634_v52 }
 0x1f8   :  { %1692 = vmatprep.mubr.msk.f32.mxu1 %vm330_vm4, %v636_v53  ;;  %1816 = vmatprep.subr.bf16.mxu0 %v1935_v3 }
 0x1fa   :  { %1705 = vmatmul.mubr.msk.f32.gmra.mrb[12].mxu0 %vm330_vm4, %v2026_v10 }
 0x1fb   :  { %1707 = vmatprep.mubr.msk.f32.mxu0 %vm1937_vm3, %v1938_v5  ;;  %1693 = vmatmul.mubr.msk.f32.gmra.mrb[8].mxu1 %vm330_vm4, %v638_v54 }
 0x1fc   :  { %1716 = vmatprep.mubr.msk.f32.mxu1 %vm330_vm4, %v835_v55 }
 0x1fe   :  { %1708 = vmatmul.mubr.msk.f32.gmra.mrb[26].mxu0 %vm330_vm4, %v2051_v15 }
 0x1ff   :  { %1755 = vmatprep.mubr.msk.f32.mxu0 %vm1937_vm3, %v1938_v5 }
 0x2c9   :  { %v814_v56 = vpop.f32.mrb[10].mxu0 }
 0x2ca   :  { %v1703_v57 = vpop.f32.mrb[11].mxu0  ;;  %v1834_v58 = vadd.f32 %v814_v56, %v88_v43  ;;  %v123_v43 = vpop.permute.xlu0 %122 }
 0x2cc   :  { %1893 = vtanh.f32 %v1834_v58 }
 0x2cd   :  { %v819_v59 = vpop.f32.mrb[12].mxu0 }
 0x2ce   :  { %v1835_v60 = vadd.f32 %v819_v59, %v2198_v19  ;;  %v1706_v61 = vpop.f32.mrb[13].mxu0  ;;  %v1042_v17 = vpop.permute.xlu0 %1041 }
 0x2d0   :  { %1895 = vtanh.f32 %v1835_v60  ;;  %v1247_v60 = vpop.permute.xlu1 %1246 }
 0x2d1   :  { %v824_v63 = vpop.f32.mrb[26].mxu0 }
 0x2d2   :  { %v830_v0 = vadd.f32 %v824_v63, %v271_v62  ;;  %v1709_v1 = vpop.f32.mrb[27].mxu0  ;;  %v1046_v47 = vpop.permute.xlu0 %1045 }
 0x2d4   :  { %1897 = vtanh.f32 %v830_v0  ;;  %v313_v63 = vpop.permute.xlu1 %312 }
 0x2d6   :  { %v1894_v2 = vpop.eup %1893 }
 0x2da   :  { %v1896_v4 = vpop.eup %1895 }
 0x2db   :  { %v1805_v8 = vpack.c.bf16 %v1896_v4, %v1894_v2 }
 0x2dd   :  { %1806 = vmatprep.subr.bf16.mxu1 %v1805_v8 }
 0x2de   :  { %v1898_v9 = vpop.eup %1897  ;;  %1808 = vmatpush3.bf16.msra.mxu1 %v1805_v8 }
 0x2df   :  { %1714 = vmatprep.subr.msk.mxu1 %vm340_vm6, %v1898_v9 }
 0x2e2   :  { %1715 = vmatpush3.msk.msra.mxu1 %vm340_vm6, %v1898_v9 }
 0x2e3   :  { %1717 = vmatmul.mubr.msk.f32.vlgmr.msra.gmra.mrb[6].mxu1 %vm330_vm4, %v837_v7  ;;  %1809 = vmatprep.subr.bf16.mxu1 %v1935_v3 }
 0x2e4   :  { %1811 = vmatpush3.bf16.msra.mxu1 %v1805_v8  ;;  %1719 = vmatprep.mubr.msk.f32.mxu1 %vm330_vm4, %v839_v13  ;;  %v323_v13 = vpop.permute.xlu1 %322 }
 0x2e5   :  { %1726 = vmatprep.subr.mxu1 %v1938_v5 }
 0x2e7   :  { %1720 = vmatmul.mubr.msk.f32.gmra.mrb[8].mxu1 %vm330_vm4, %v841_v12 }
 0x2e8   :  { %1727 = vmatpush3.msk.msra.mxu1 %vm340_vm6, %v1898_v9  ;;  %1728 = vmatprep.mubr.msk.f32.mxu1 %vm1937_vm3, %v1938_v5 }
 0x2eb   :  { %1729 = vmatmul.mubr.msk.f32.vlgmr.msra.gmra.mrb[16].mxu1 %vm330_vm4, %v2007_v6 }
 0x2ec   :  { %1731 = vmatprep.mubr.msk.f32.mxu1 %vm1937_vm3, %v1938_v5 }
 0x2ef   :  { %1732 = vmatmul.mubr.msk.f32.gmra.mrb[18].mxu1 %vm330_vm4, %v2026_v10 }
 0x2f0   :  { %1734 = vmatprep.mubr.msk.f32.mxu1 %vm1937_vm3, %v1938_v5 }
 0x2f3   :  { %1735 = vmatmul.mubr.msk.f32.gmra.mrb[20].mxu1 %vm330_vm4, %v2051_v15 }
 0x2f4   :  { %1743 = vmatprep.mubr.msk.f32.mxu1 %vm330_vm4, %v1040_v18 }
 0x3be   :  { %v1008_v19 = vpop.f32.mrb[16].mxu1 }
 0x3bf   :  { %v1025_v20 = vrot.slane %v1008_v19, 4  ;;  %v1730_v21 = vpop.f32.mrb[17].mxu1 }
 0x3c1   :  { %v1033_v22 = vadd.f32 %v1025_v20, %v271_v62 }
 0x3c2   :  { %v1013_v23 = vpop.f32.mrb[18].mxu1 }
 0x3c3   :  { %v1026_v25 = vrot.slane %v1013_v23, 4  ;;  %v1733_v26 = vpop.f32.mrb[19].mxu1  ;;  %1899 = vtanh.f32 %v1033_v22  ;;  %v1354_v22 = vld [vmem:[%s2328_s6] sm:$0x1]  ;;  %v1361_v23 = vlaneseq }
 0x3c4   :  { %v1359_v26 = vpop.permute.xlu1 %1358 }
 0x3c5   :  { %v1027_v28 = vsel %vm340_vm6, %v1025_v20, %v1026_v25  ;;  %v1362_v24 = vshrl.u32 %v1361_v23, 7 }
 0x3c6   :  { %v1034_v29 = vadd.f32 %v1027_v28, %v276_v27  ;;  %v1018_v30 = vpop.f32.mrb[20].mxu1 }
 0x3c7   :  { %v1028_v31 = vrot.slane %v1018_v30, 4  ;;  %v1736_v32 = vpop.f32.mrb[21].mxu1 }
 0x3c8   :  { %1901 = vtanh.f32 %v1034_v29 }
 0x3c9   :  { %v1029_v34 = vsel %vm340_vm6, %v1026_v25, %v1028_v31  ;;  %v1363_v25 = vsub.s32 0, %v1362_v24 }
 0x3ca   :  { %v1035_v35 = vadd.f32 %v1029_v34, %v281_v33 }
 0x3cb   :  { %v1364_v27 = vrot.slane %v1359_v26, %v1363_v25 }
 0x3cc   :  { %1903 = vtanh.f32 %v1035_v35 }
 0x3cd   :  { %v1900_v36 = vpop.eup %1899 }
 0x3ce   :  { %v1050_v39 = vrot.slane %v1900_v36, 4 }
 0x3d2   :  { %v1902_v37 = vpop.eup %1901 }
 0x3d3   :  { %v1051_v40 = vrot.slane %v1902_v37, 4 }
 0x3d5   :  { %v1052_v14 = vsel %vm340_vm6, %v1050_v39, %v1051_v40 }
 0x3d6   :  { %v1904_v41 = vpop.eup %1903 }
 0x3d7   :  { %v1053_v42 = vrot.slane %v1904_v41, 4 }
 0x3d9   :  { %v1054_v44 = vsel %vm340_vm6, %v1051_v40, %v1053_v42 }
 0x3da   :  { %v1812_v45 = vpack.c.bf16 %v1054_v44, %v1052_v14 }
 0x3dc   :  { %1813 = vmatprep.subr.bf16.mxu1 %v1812_v45  ;;  %1818 = vmatpush3.bf16.msra.mxu0 %v1812_v45 }
 0x3dd   :  { %1815 = vmatpush3.bf16.msra.mxu1 %v1812_v45  ;;  %1753 = vmatprep.subr.mxu0 %v1938_v5 }
 0x3de   :  { %1741 = vmatprep.subr.msk.mxu1 %vm340_vm6, %v1053_v42 }
 0x3e0   :  { %1754 = vmatpush3.msk.msra.mxu0 %vm340_vm6, %v1053_v42 }
 0x3e1   :  { %1742 = vmatpush3.msk.msra.mxu1 %vm340_vm6, %v1053_v42  ;;  %1756 = vmatmul.mubr.msk.f32.vlgmr.msra.gmra.mrb[20].mxu0 %vm330_vm4, %v2007_v6 }
 0x3e2   :  { %1758 = vmatprep.mubr.msk.f32.mxu0 %vm1937_vm3, %v1938_v5  ;;  %1744 = vmatmul.mubr.msk.f32.vlgmr.msra.gmra.mrb[6].mxu1 %vm330_vm4, %v1042_v17 }
 0x3e3   :  { %1746 = vmatprep.mubr.msk.f32.mxu1 %vm330_vm4, %v1044_v46 }
 0x3e5   :  { %1759 = vmatmul.mubr.msk.f32.gmra.mrb[22].mxu0 %vm330_vm4, %v2026_v10 }
 0x3e6   :  { %1761 = vmatprep.mubr.msk.f32.mxu0 %vm1937_vm3, %v1938_v5  ;;  %1747 = vmatmul.mubr.msk.f32.gmra.mrb[8].mxu1 %vm330_vm4, %v1046_v47 }
 0x3e7   :  { %1770 = vmatprep.mubr.msk.f32.mxu1 %vm330_vm4, %v1243_v48 }
 0x3e9   :  { %1762 = vmatmul.mubr.msk.f32.gmra.mrb[24].mxu0 %vm330_vm4, %v2051_v15  ;;  %v1245_v15 = vpop.permute.xlu0 %1244 }
 0x3ed   :  { %v1249_v61 = vpop.permute.xlu0 %1248 }
 0x3f1   :  { %v318_v62 = vpop.permute.xlu0 %317 }
 0x3f5   :  { %v328_v8 = vpop.permute.xlu0 %327 }
 0x4b4   :  { %v1222_v6 = vpop.f32.mrb[20].mxu0 }
 0x4b5   :  { %v1757_v49 = vpop.f32.mrb[21].mxu0  ;;  %v1836_v50 = vadd.f32 %v1222_v6, %v113_v38 }
 0x4b7   :  { %1905 = vtanh.f32 %v1836_v50 }
 0x4b8   :  { %v1227_v51 = vpop.f32.mrb[22].mxu0 }
 0x4b9   :  { %v1837_v52 = vadd.f32 %v1227_v51, %v118_v16  ;;  %v1760_v53 = vpop.f32.mrb[23].mxu0 }
 0x4bb   :  { %1907 = vtanh.f32 %v1837_v52 }
 0x4bc   :  { %v1232_v10 = vpop.f32.mrb[24].mxu0 }
 0x4bd   :  { %v1838_v54 = vadd.f32 %v1232_v10, %v123_v43  ;;  %v1763_v55 = vpop.f32.mrb[25].mxu0 }
 0x4bf   :  { %1909 = vtanh.f32 %v1838_v54 }
 0x4c1   :  { %v1906_v56 = vpop.eup %1905 }
 0x4c5   :  { %v1908_v57 = vpop.eup %1907 }
 0x4c6   :  { %v1819_v58 = vpack.c.bf16 %v1908_v57, %v1906_v56 }
 0x4c8   :  { %1820 = vmatprep.subr.bf16.mxu1 %v1819_v58 }
 0x4c9   :  { %v1910_v59 = vpop.eup %1909  ;;  %1822 = vmatpush3.bf16.msra.mxu1 %v1819_v58 }
 0x4ca   :  { %1768 = vmatprep.subr.msk.mxu1 %vm340_vm6, %v1910_v59 }
 0x4cd   :  { %1769 = vmatpush3.msk.msra.mxu1 %vm340_vm6, %v1910_v59 }
 0x4ce   :  { %1771 = vmatmul.mubr.msk.f32.vlgmr.msra.gmra.mrb[6].mxu1 %vm330_vm4, %v1245_v15  ;;  %1823 = vmatprep.subr.bf16.mxu1 %v1935_v3 }
 0x4cf   :  { %1773 = vmatprep.mubr.msk.f32.mxu1 %vm330_vm4, %v1247_v60 }
 0x4d2   :  { %1774 = vmatmul.mubr.msk.f32.gmra.mrb[8].mxu1 %vm330_vm4, %v1249_v61 }
 0x4d3   :  { %1784 = vmatprep.mubr.msk.f32.mxu1 %vm1937_vm3, %v1938_v5 }
 0x5a1   :  { %v1772_v0 = vpop.f32.mrb[6].mxu1 }
 0x5a2   :  { %v1839_v1 = vadd.f32 %v1772_v0, %v318_v62  ;;  %v1327_v2 = vpop.f32.mrb[7].mxu1 }
 0x5a3   :  { %v1840_v4 = vadd.f32 %v1327_v2, %v313_v63 }
 0x5a4   :  { %v1351_v7 = vmax.f32 %v1839_v1, 0.0 }
 0x5a5   :  { %v1350_v9 = vmax.f32 %v1840_v4, 0.0  ;;  %v1775_v12 = vpop.f32.mrb[8].mxu1 }
 0x5a6   :  { %v1841_v11 = vadd.f32 %v1775_v12, %v328_v8  ;;  %v1337_v16 = vpop.f32.mrb[9].mxu1 }
 0x5a7   :  { %v1824_v18 = vpack.c.bf16 %v1351_v7, %v1350_v9  ;;  %v1842_v19 = vadd.f32 %v1337_v16, %v323_v13 }
 0x5a8   :  { %v1353_v20 = vmax.f32 %v1841_v11, 0.0 }
 0x5a9   :  { %v1352_v21 = vmax.f32 %v1842_v19, 0.0  ;;  %1825 = vmatpush3.bf16.msra.mxu1 %v1824_v18 }
 0x5aa   :  { %1826 = vmatprep.subr.bf16.mxu1 %v1935_v3 }
 0x5ab   :  { %v1827_v5 = vpack.c.bf16 %v1353_v20, %v1352_v21 }
 0x5ad   :  { %1829 = vmatpush3.bf16.msk.msra.mxu1 %vm1828_vm8, %v1827_v5 }
 0x5b0   :  { %1785 = vmatmul.mubr.msk.f32.vlgmr.msra.gmra.mrb[22].mxu1 %vm1365_vm9, %v1354_v22 }
 0x683   :  { %v1439_v28 = vpop.f32.mrb[22].mxu1 }
 0x684   :  { %v1440_v29 = vadd.f32 %v1439_v28, %v1364_v27  ;;  %v1786_v30 = vpop.f32.mrb[23].mxu1 }
 0x686   :  { %1444 = vst.msk [vmem:[#allocation3] sm:$0x1] %vm1443_vm10, %v1440_v29 }
 0x687   :  { %1922 = shalt.err (!%p1919_p4)
}
 0x688   :  { %s1923_s14 = scalar_lea.hbm %s2330_s8, 16 }
 0x689   :  { %p1924_p5 = scmp.ne.s32.totalorder %s2330_s8, %s1923_s14  ;;  %p1927_p6 = scmp.lt.u32.totalorder %s1923_s14, %s2330_s8 }
 0x68b   :  { %p1929_p7 = pnand %p1927_p6, %p1924_p5 }
 0x68d   :  { %1932 = shalt.err (!%p1929_p7)
}
 0x68e   :  { %1454 = dma.vmem_to_hbm [thread:$0]  %s1452_s11, 16, %s2330_s8, [#allocation4]  }
 0x68f   :  { %1933 = dma.done.wait [#allocation4], 16  }
 0x690   :  { %1934 = vsyncadd [#allocation4], 4294967280 }
 0x691   :  { %1458 = vsyncpa [#allocation4], 1 }

</bundles_post_ra>
